<compile_context>
chip_gen: v7x
topology: tpu7x:2x2x1
jax: 0.10.0
libtpu: 0.0.40
codegen_flags: <defaults>
</compile_context>

<pallas_src>
import functools
import math

import jax
import jax.numpy as jnp
from jax.experimental import pallas as pl
from jax.experimental.pallas import tpu as pltpu


# ----------------------------------------------------------------------------
# Tiling / compiler-parameter helpers
# ----------------------------------------------------------------------------
@functools.lru_cache(maxsize=None)
def _vmem_limit_bytes():
    """Scoped-VMEM budget: ~75% of physical, clamped to [32, 96] MiB."""
    mib = 1024 * 1024
    try:
        phys = int(getattr(pltpu.get_tpu_info(), "vmem_capacity_bytes", 64 * mib))
    except Exception:  # conservative fallback (v7x-sized per-TC VMEM)
        phys = 64 * mib
    return max(32 * mib, min(96 * mib, (phys * 3) // 4))


def _cparams(grid_rank):
    # Every grid axis we emit is independent -> mark them all "parallel" so the
    # v7x dual TensorCores can shard them.
    return pltpu.CompilerParams(
        dimension_semantics=("parallel",) * grid_rank,
        vmem_limit_bytes=_vmem_limit_bytes(),
    )


def _tile(m, cap):
    """Largest divisor of m that is <= cap (prefer multiples of 8).

    Guarded: never silently returns an oversized single block when m > cap.
    """
    if m <= cap:
        return m
    best, best8 = 1, 0
    for t in range(2, cap + 1):
        if m % t == 0:
            best = t
            if t % 8 == 0:
                best8 = t
    return best8 if best8 else best


def _row_tile(m):
    # Memory-bound row-wise kernels only reach the HBM roofline at >=512 rows.
    return _tile(m, 512)


def _seq_tile(s):
    return _tile(s, 256)


# ----------------------------------------------------------------------------
# Pallas kernels
# ----------------------------------------------------------------------------
def linear_kernel(x_ref, w_ref, b_ref, o_ref):
    # o = x @ w + b   (bf16 matmul inputs, f32 accumulation)
    o_ref[...] = (
        jnp.dot(x_ref[...], w_ref[...], preferred_element_type=jnp.float32)
        + b_ref[...]
    ).astype(o_ref.dtype)


def _layernorm(y, g, b):
    # f32 LayerNorm math (eps matches nn.LayerNorm default).
    mu = jnp.mean(y, axis=-1, keepdims=True)
    var = jnp.mean((y - mu) ** 2, axis=-1, keepdims=True)
    return (y - mu) * jax.lax.rsqrt(var + 1e-5) * g + b


def layernorm_kernel(x_ref, g_ref, b_ref, o_ref):
    y = _layernorm(x_ref[...].astype(jnp.float32), g_ref[...], b_ref[...])
    o_ref[...] = y.astype(o_ref.dtype)


def geglu_ff_ln_kernel(x_ref, w1a_ref, b1a_ref, w1b_ref, b1b_ref,
                       w2_ref, b2_ref, g_ref, beta_ref, o_ref):
    # Fused GEGLU feed-forward + residual add + LayerNorm (post-norm).
    x = x_ref[...]                                                  # (tm, E) bf16
    a = jnp.dot(x, w1a_ref[...], preferred_element_type=jnp.float32) + b1a_ref[...]
    b = jnp.dot(x, w1b_ref[...], preferred_element_type=jnp.float32) + b1b_ref[...]
    # TODO(synk): PyTorch F.gelu default is the exact erf form; tanh approx used
    # here for guaranteed Mosaic lowering (EUP tanh).
    h = (a * jax.nn.gelu(b, approximate=True)).astype(jnp.bfloat16)
    ff = jnp.dot(h, w2_ref[...], preferred_element_type=jnp.float32) + b2_ref[...]
    y = _layernorm(ff + x.astype(jnp.float32), g_ref[...], beta_ref[...])
    o_ref[...] = y.astype(o_ref.dtype)


def mha_ln_kernel(xq_ref, xkv_ref, wq_ref, bq_ref, wkv_ref, bkv_ref,
                  wo_ref, bo_ref, g_ref, beta_ref, o_ref, *,
                  nhead, head_dim, causal, q_tile):
    """Fused Q/KV projection + batched-head SDPA + output projection
    + residual add + LayerNorm for one (batch, q-tile) block."""
    hd = nhead * head_dim
    xq = xq_ref[0]                                                   # (tq, E) bf16
    xkv = xkv_ref[0]                                                 # (Sk, E) bf16
    tq, sk = xq.shape[0], xkv.shape[0]

    # Projections (f32 accumulation), cast to bf16 ONCE after the bias add.
    q = (jnp.dot(xq, wq_ref[...], preferred_element_type=jnp.float32)
         + bq_ref[...]).astype(jnp.bfloat16)                         # (tq, hd)
    kv = (jnp.dot(xkv, wkv_ref[...], preferred_element_type=jnp.float32)
          + bkv_ref[...]).astype(jnp.bfloat16)                       # (Sk, 2*hd)
    k = kv[:, :hd]
    v = kv[:, hd:]

    # Batched-head layout (H, S, Dh): one reshape/transpose each, no per-head loop.
    qh = jnp.transpose(q.reshape(tq, nhead, head_dim), (1, 0, 2))
    kh = jnp.transpose(k.reshape(sk, nhead, head_dim), (1, 0, 2))
    vh = jnp.transpose(v.reshape(sk, nhead, head_dim), (1, 0, 2))

    s = jnp.einsum("hqd,hkd->hqk", qh, kh,
                   preferred_element_type=jnp.float32)               # (H, tq, Sk)
    s = s * jnp.float32(1.0 / math.sqrt(head_dim))
    if causal:
        row = (q_tile * pl.program_id(1)
               + jax.lax.broadcasted_iota(jnp.int32, (tq, sk), 0))
        col = jax.lax.broadcasted_iota(jnp.int32, (tq, sk), 1)
        neg = jnp.where(col > row, jnp.float32(-1e30), jnp.float32(0.0))
        s = s + neg[None, :, :]

    s = s - jnp.max(s, axis=-1, keepdims=True)
    p = jnp.exp(s)
    p = p * pl.reciprocal(jnp.sum(p, axis=-1, keepdims=True), approx=True)

    ctx = jnp.einsum("hqk,hkd->hqd", p.astype(jnp.bfloat16), vh,
                     preferred_element_type=jnp.float32)             # (H, tq, Dh)
    ctx = jnp.transpose(ctx, (1, 0, 2)).reshape(tq, hd).astype(jnp.bfloat16)

    # Single full-K output projection (no per-head accumulation).
    attn = (jnp.dot(ctx, wo_ref[...], preferred_element_type=jnp.float32)
            + bo_ref[...])                                           # (tq, E) f32

    # Fused residual add + LayerNorm (post-norm, f32 math).
    y = _layernorm(attn + xq.astype(jnp.float32), g_ref[...], beta_ref[...])
    o_ref[0] = y.astype(o_ref.dtype)


# ----------------------------------------------------------------------------
# Pallas wrappers
# ----------------------------------------------------------------------------
def pallas_linear(x, w, b, out_dtype=jnp.bfloat16):
    orig_shape = x.shape
    k = orig_shape[-1]
    n = w.shape[1]
    x2 = x.reshape(-1, k)
    m = x2.shape[0]
    tm = _row_tile(m)
    tn = _tile(n, 512)
    out = pl.pallas_call(
        linear_kernel,
        out_shape=jax.ShapeDtypeStruct((m, n), out_dtype),
        grid=(m // tm, n // tn),
        in_specs=[
            pl.BlockSpec((tm, k), lambda i, j: (i, 0)),
            pl.BlockSpec((k, tn), lambda i, j: (0, j)),
            pl.BlockSpec((1, tn), lambda i, j: (0, j)),
        ],
        out_specs=pl.BlockSpec((tm, tn), lambda i, j: (i, j)),
        compiler_params=_cparams(2),
    )(x2, w, b.reshape(1, n))
    return out.reshape(orig_shape[:-1] + (n,))


def pallas_layernorm(x, g, b, out_dtype=jnp.bfloat16):
    orig_shape = x.shape
    d = orig_shape[-1]
    x2 = x.reshape(-1, d)
    m = x2.shape[0]
    tm = _row_tile(m)
    out = pl.pallas_call(
        layernorm_kernel,
        out_shape=jax.ShapeDtypeStruct((m, d), out_dtype),
        grid=(m // tm,),
        in_specs=[
            pl.BlockSpec((tm, d), lambda i: (i, 0)),
            pl.BlockSpec((1, d), lambda i: (0, 0)),
            pl.BlockSpec((1, d), lambda i: (0, 0)),
        ],
        out_specs=pl.BlockSpec((tm, d), lambda i: (i, 0)),
        compiler_params=_cparams(1),
    )(x2, g.reshape(1, d), b.reshape(1, d))
    return out.reshape(orig_shape)


def pallas_geglu_ff_ln(x, ff, ln, out_dtype=jnp.bfloat16):
    # LayerNorm(x + GEGLU_FF(x)) fully fused (residual held in VMEM).
    orig_shape = x.shape
    e = orig_shape[-1]
    f = ff["w1a"].shape[1]
    x2 = x.reshape(-1, e)
    m = x2.shape[0]
    tm = _row_tile(m)
    out = pl.pallas_call(
        geglu_ff_ln_kernel,
        out_shape=jax.ShapeDtypeStruct((m, e), out_dtype),
        grid=(m // tm,),
        in_specs=[
            pl.BlockSpec((tm, e), lambda i: (i, 0)),
            pl.BlockSpec((e, f), lambda i: (0, 0)),
            pl.BlockSpec((1, f), lambda i: (0, 0)),
            pl.BlockSpec((e, f), lambda i: (0, 0)),
            pl.BlockSpec((1, f), lambda i: (0, 0)),
            pl.BlockSpec((f, e), lambda i: (0, 0)),
            pl.BlockSpec((1, e), lambda i: (0, 0)),
            pl.BlockSpec((1, e), lambda i: (0, 0)),
            pl.BlockSpec((1, e), lambda i: (0, 0)),
        ],
        out_specs=pl.BlockSpec((tm, e), lambda i: (i, 0)),
        compiler_params=_cparams(1),
    )(x2, ff["w1a"], ff["b1a"].reshape(1, f), ff["w1b"], ff["b1b"].reshape(1, f),
      ff["w2"], ff["b2"].reshape(1, e), ln["g"].reshape(1, e), ln["b"].reshape(1, e))
    return out.reshape(orig_shape)


def pallas_mha_ln(xq, xkv, attn, ln, nhead, head_dim, causal):
    """LayerNorm(xq + MHA(xq, xkv, xkv)), grid over (batch, q-tile)."""
    B, Sq, E = xq.shape
    Sk = xkv.shape[1]
    hd = nhead * head_dim
    tq = _seq_tile(Sq)
    kernel = functools.partial(mha_ln_kernel, nhead=nhead, head_dim=head_dim,
                               causal=causal, q_tile=tq)
    return pl.pallas_call(
        kernel,
        out_shape=jax.ShapeDtypeStruct((B, Sq, E), jnp.bfloat16),
        grid=(B, Sq // tq),
        in_specs=[
            pl.BlockSpec((1, tq, E), lambda b, i: (b, i, 0)),
            pl.BlockSpec((1, Sk, E), lambda b, i: (b, 0, 0)),
            pl.BlockSpec((E, hd), lambda b, i: (0, 0)),
            pl.BlockSpec((1, hd), lambda b, i: (0, 0)),
            pl.BlockSpec((E, 2 * hd), lambda b, i: (0, 0)),
            pl.BlockSpec((1, 2 * hd), lambda b, i: (0, 0)),
            pl.BlockSpec((hd, E), lambda b, i: (0, 0)),
            pl.BlockSpec((1, E), lambda b, i: (0, 0)),
            pl.BlockSpec((1, E), lambda b, i: (0, 0)),
            pl.BlockSpec((1, E), lambda b, i: (0, 0)),
        ],
        out_specs=pl.BlockSpec((1, tq, E), lambda b, i: (b, i, 0)),
        compiler_params=_cparams(2),
    )(xq, xkv, attn["wq"], attn["bq"].reshape(1, hd),
      attn["wkv"], attn["bkv"].reshape(1, 2 * hd),
      attn["wo"], attn["bo"].reshape(1, E),
      ln["g"].reshape(1, E), ln["b"].reshape(1, E))


# ----------------------------------------------------------------------------
# Model pieces (plain-JAX glue around the Pallas kernels)
# ----------------------------------------------------------------------------
def sinusoidal(length, dim):
    # TODO(synk): original repo's `sinusoidal` not shown; standard interleaved
    # sin/cos used.
    pos = jnp.arange(length, dtype=jnp.float32)[:, None]
    i = jnp.arange(dim // 2, dtype=jnp.float32)[None, :]
    angle = pos / jnp.power(10000.0, 2.0 * i / dim)
    pe = jnp.zeros((length, dim), jnp.float32)
    pe = pe.at[:, 0::2].set(jnp.sin(angle))
    pe = pe.at[:, 1::2].set(jnp.cos(angle))
    return pe


def encoder_layer(p, x, nhead, head_dim):
    # post-norm (PyTorch default norm_first=False); dropout omitted (eval mode)
    x = pallas_mha_ln(x, x, p["self_attn"], p["ln1"], nhead, head_dim, causal=False)
    x = pallas_geglu_ff_ln(x, p["ff"], p["ln2"])
    return x


def decoder_layer(p, x, memory, nhead, head_dim):
    x = pallas_mha_ln(x, x, p["self_attn"], p["ln1"], nhead, head_dim, causal=True)
    x = pallas_mha_ln(x, memory, p["cross_attn"], p["ln2"], nhead, head_dim,
                      causal=False)
    x = pallas_geglu_ff_ln(x, p["ff"], p["ln3"])
    return x


def midi2spec_forward(params, midi_tokens, spec, nhead, head_dim):
    B, S_in = midi_tokens.shape
    S_out = spec.shape[1]

    # embedding gather + positional add kept in plain JAX (glue)
    midi = (params["emb"][midi_tokens]
            + params["in_pos_emb"][:S_in]).astype(jnp.bfloat16)
    spec_e = (pallas_linear(spec.astype(jnp.bfloat16),
                            params["linear_in"]["w"], params["linear_in"]["b"],
                            out_dtype=jnp.float32)
              + params["out_pos_emb"][:S_out]).astype(jnp.bfloat16)

    mem = midi
    for lp in params["enc_layers"]:
        mem = encoder_layer(lp, mem, nhead, head_dim)
    mem = pallas_layernorm(mem, params["enc_norm"]["g"], params["enc_norm"]["b"])

    x = spec_e
    for lp in params["dec_layers"]:
        x = decoder_layer(lp, x, mem, nhead, head_dim)
    x = pallas_layernorm(x, params["dec_norm"]["g"], params["dec_norm"]["b"])

    return pallas_linear(x, params["linear_out"]["w"], params["linear_out"]["b"],
                         out_dtype=jnp.float32)


# ----------------------------------------------------------------------------
# Deterministic parameter init (synthetic; no checkpoint load)
# ----------------------------------------------------------------------------
def init_params(key, num_emb, output_dim, max_in, max_out,
                emb_dim, nhead, head_dim, dff, n_enc, n_dec):
    keys = iter(jax.random.split(key, 256))
    hd = nhead * head_dim

    def nrm(shape, scale=0.02, dtype=jnp.bfloat16):
        return (jax.random.normal(next(keys), shape, jnp.float32) * scale).astype(dtype)

    def zeros(n):
        return jnp.zeros((n,), jnp.float32)

    def linear(din, dout):
        return {"w": nrm((din, dout)), "b": zeros(dout)}

    def mha():
        # Q separate, K/V fused; output projection hd -> emb.
        return {"wq": nrm((emb_dim, hd)), "bq": zeros(hd),
                "wkv": nrm((emb_dim, 2 * hd)), "bkv": zeros(2 * hd),
                "wo": nrm((hd, emb_dim)), "bo": zeros(emb_dim)}

    def ln():
        return {"g": jnp.ones((emb_dim,), jnp.float32), "b": zeros(emb_dim)}

    def ff():
        # W1 pre-split into the two GEGLU halves (value-gate, gelu-gate).
        return {"w1a": nrm((emb_dim, dff)), "b1a": zeros(dff),
                "w1b": nrm((emb_dim, dff)), "b1b": zeros(dff),
                "w2": nrm((dff, emb_dim)), "b2": zeros(emb_dim)}

    return {
        "emb": nrm((num_emb, emb_dim), 1.0, jnp.float32),
        "in_pos_emb": sinusoidal(max_in, emb_dim),
        "out_pos_emb": sinusoidal(max_out, emb_dim),
        "linear_in": linear(output_dim, emb_dim),
        "linear_out": linear(emb_dim, output_dim),
        "enc_layers": [
            {"self_attn": mha(), "ln1": ln(), "ff": ff(), "ln2": ln()}
            for _ in range(n_enc)
        ],
        "dec_layers": [
            {"self_attn": mha(), "ln1": ln(), "cross_attn": mha(),
             "ln2": ln(), "ff": ff(), "ln3": ln()}
            for _ in range(n_dec)
        ],
        "enc_norm": ln(),
        "dec_norm": ln(),
    }


# ----------------------------------------------------------------------------
if __name__ == "__main__":
    key = jax.random.PRNGKey(0)
    kp, kt, ks = jax.random.split(key, 3)

    # small shapes consistent with the module
    B, S_in, S_out = 2, 8, 8
    num_emb, output_dim = 32, 16
    emb_dim, nhead, head_dim = 32, 2, 16
    dff = 64
    n_enc = n_dec = 2
    max_in = max_out = 16

    params = init_params(kp, num_emb, output_dim, max_in, max_out,
                         emb_dim, nhead, head_dim, dff, n_enc, n_dec)

    midi_tokens = jax.random.randint(kt, (B, S_in), 0, num_emb, dtype=jnp.int32)
    spec = jax.random.normal(ks, (B, S_out, output_dim), jnp.float32)

    out = midi2spec_forward(params, midi_tokens, spec, nhead, head_dim)
    out = jax.block_until_ready(out)
    assert out.shape == (B, S_out, output_dim)
    assert bool(jnp.all(jnp.isfinite(out)))
    print("KERNEL_OK")
</pallas_src>

<mosaic_0001>
module attributes {stable_mosaic.version = 11 : i64} {
  func.func @linear_kernel(%arg0: i32, %arg1: i32, %arg2: memref<16x16xbf16, #tpu.memory_space<vmem>>, %arg3: memref<16x32xbf16, #tpu.memory_space<vmem>>, %arg4: memref<1x32xf32, #tpu.memory_space<vmem>>, %arg5: memref<16x32xf32, #tpu.memory_space<vmem>>) attributes {dimension_semantics = [#tpu.dimension_semantics<parallel>, #tpu.dimension_semantics<parallel>], iteration_bounds = array<i64: 1, 1>, scalar_prefetch = 0 : i64, scratch_operands = 0 : i64, tpu.core_type = #tpu.core_type<tc>, window_params = [{transform_indices = @transform_0, window_bounds = array<i64: 16, 16>}, {transform_indices = @transform_1, window_bounds = array<i64: 16, 32>}, {transform_indices = @transform_2, window_bounds = array<i64: 1, 32>}, {transform_indices = @transform_3, window_bounds = array<i64: 16, 32>}]} {
    %c0 = arith.constant 0 : index
    %c0_0 = arith.constant 0 : index
    %0 = vector.load %arg2[%c0, %c0_0] : memref<16x16xbf16, #tpu.memory_space<vmem>>, vector<16x16xbf16>
    %c0_1 = arith.constant 0 : index
    %c0_2 = arith.constant 0 : index
    %1 = vector.load %arg3[%c0_1, %c0_2] : memref<16x32xbf16, #tpu.memory_space<vmem>>, vector<16x32xbf16>
    %cst = arith.constant dense<0.000000e+00> : vector<16x32xf32>
    %2 = tpu.matmul %0, %1, %cst {dimension_numbers = #tpu.dot_dimension_numbers<[1], [0], [0], [1], [0, 0, 1, 1], [], []>} : vector<16x16xbf16>, vector<16x32xbf16>, vector<16x32xf32> -> vector<16x32xf32>
    %c0_3 = arith.constant 0 : index
    %c0_4 = arith.constant 0 : index
    %3 = vector.load %arg4[%c0_3, %c0_4] : memref<1x32xf32, #tpu.memory_space<vmem>>, vector<1x32xf32>
    %4 = vector.broadcast %3 : vector<1x32xf32> to vector<16x32xf32>
    %5 = arith.addf %2, %4 : vector<16x32xf32>
    %c0_5 = arith.constant 0 : index
    %c0_6 = arith.constant 0 : index
    %6 = vector.load %arg5[%c0_5, %c0_6] : memref<16x32xf32, #tpu.memory_space<vmem>>, vector<16x32xf32>
    tpu.vector_store %arg5[%c0_5, %c0_6], %5 {strides = array<i32>} : memref<16x32xf32, #tpu.memory_space<vmem>>, vector<16x32xf32>,
    return
  }
  func.func @transform_0(%arg0: i32, %arg1: i32) -> (i32, i32) {
    %c0_i32 = arith.constant 0 : i32
    %c0_i32_0 = arith.constant 0 : i32
    return %arg0, %c0_i32 : i32, i32
  }
  func.func @transform_1(%arg0: i32, %arg1: i32) -> (i32, i32) {
    %c0_i32 = arith.constant 0 : i32
    %c0_i32_0 = arith.constant 0 : i32
    return %c0_i32, %arg1 : i32, i32
  }
  func.func @transform_2(%arg0: i32, %arg1: i32) -> (i32, i32) {
    %c0_i32 = arith.constant 0 : i32
    %c0_i32_0 = arith.constant 0 : i32
    return %c0_i32, %arg1 : i32, i32
  }
  func.func @transform_3(%arg0: i32, %arg1: i32) -> (i32, i32) {
    %c0_i32 = arith.constant 0 : i32
    return %arg0, %arg1 : i32, i32
  }
}

</mosaic_0001>

<bundles_post_ra>
// kernel: tpu_custom_call.1
= control target key start
LH: loop header
LB: loop body
LE: loop exit
PB: predicated region body
PF: predicated region fallthrough
CT: control target
= control target key end

     0   :  { %8 = vsyncpa [#allocation3], 0  ;;  %s295_s0 = inlined_call_operand.hbm [shape: bf16[16,16], index: 0, kind: input, shape index: {}]   ;;  %s296_s1 = inlined_call_operand.hbm [shape: bf16[16,32], index: 1, kind: input, shape index: {}]   ;;  %s297_s2 = inlined_call_operand.vmem [shape: f32[1,32], index: 2, kind: input, shape index: {}]   ;;  %s298_s3 = inlined_call_operand.hbm [shape: f32[16,32], index: 3, kind: output, shape index: {}]  }
   0x1   :  { %9 = vsyncpa [#allocation6], 0 }
   0x2   :  { %10 = vsyncpa [#allocation4], 0  ;;  %s227_s12 = smov [#allocation2]   ;;  %s155_s16 = scalar_lea.hbm %s295_s0, 128 }
   0x3   :  { %s16_s13 = sshll.u32 %s227_s12, 4  ;;  %p156_p0 = scmp.ne.s32.totalorder %s295_s0, %s155_s16  ;;  %s17_s13 = int_to_ptr.vmem [resolvable:$true] %s16_s13 }
   0x4   :  { %p159_p1 = scmp.lt.u32.totalorder %s155_s16, %s295_s0 }
   0x6   :  { %p161_p2 = pnand %p159_p1, %p156_p0 }
   0x8   :  { %164 = shalt.err (!%p161_p2)
}
   0x9   :  { %s165_s21 = scalar_lea.vmem %s17_s13, 128  ;;  %p170_p4 = scmp.lt.s32.totalorder %s17_s13, %s17_s13 }
   0xa   :  { %p166_p3 = scmp.ne.s32.totalorder %s17_s13, %s165_s21  ;;  %p171_p5 = scmp.lt.s32.totalorder %s165_s21, %s165_s21 }
   0xc   :  { %p172_p6 = por %p171_p5, %p170_p4 }
   0xe   :  { %p173_p7 = pnand %p172_p6, %p166_p3 }
  0x10   :  { %176 = shalt.err (!%p173_p7)
}
  0x11   :  { %s228_s22 = smov 64   ;;  %s229_s23 = smov 4  }
  0x12   :  { %22 = dma.hbm_to_vmem [thread:$0]  %s295_s0, 128, %s17_s13, [#allocation3], %s228_s22, %s228_s22, %s229_s23  }
  0x13   :  { %s230_s26 = smov [#allocation5]   ;;  %s177_s30 = scalar_lea.hbm %s296_s1, 128 }
  0x14   :  { %s28_s27 = sshll.u32 %s230_s26, 4  ;;  %p178_p8 = scmp.ne.s32.totalorder %s296_s1, %s177_s30  ;;  %s29_s27 = int_to_ptr.vmem [resolvable:$true] %s28_s27 }
  0x15   :  { %p181_p9 = scmp.lt.u32.totalorder %s177_s30, %s296_s1 }
  0x17   :  { %p183_p10 = pnand %p181_p9, %p178_p8 }
  0x19   :  { %186 = shalt.err (!%p183_p10)
}
  0x1a   :  { %s187_s8 = scalar_lea.vmem %s29_s27, 128  ;;  %p192_p12 = scmp.lt.s32.totalorder %s29_s27, %s29_s27 }
  0x1b   :  { %p188_p11 = scmp.ne.s32.totalorder %s29_s27, %s187_s8  ;;  %p193_p13 = scmp.lt.s32.totalorder %s187_s8, %s187_s8 }
  0x1d   :  { %p194_p0 = por %p193_p13, %p192_p12 }
  0x1f   :  { %p195_p1 = pnand %p194_p0, %p188_p11 }
  0x21   :  { %198 = shalt.err (!%p195_p1)
}
  0x22   :  { %34 = dma.hbm_to_vmem [thread:$0]  %s296_s1, 128, %s29_s27, [#allocation6], %s228_s22, %s228_s22, %s229_s23  }
  0x23   :  { %221 = dma.done.wait [#allocation3], 128  }
  0x24   :  { %222 = vsyncadd [#allocation3], 4294967168 }
  0x25   :  { %223 = dma.done.wait [#allocation6], 128  }
  0x26   :  { %224 = vsyncadd [#allocation6], 4294967168  ;;  %v231_v0 = vmov 0.0   ;;  %vm232_vm0 = vmmov 0   ;;  %v153_v1 = vld [vmem:[#allocation5] sm:$0xff]   ;;  %v154_v2 = vld [vmem:[#allocation2] sm:$0xff]  }
  0x27   :  { %138 = vmatprep.subr.bf16.mxu0 %v231_v0  ;;  %140 = vmatprep.mubr.msk.bf16.mxu0 %vm232_vm0, %v231_v0  ;;  %vm66_vm1 = vcmask 130048   ;;  %v132_v3 = vld [vmem:[%s297_s2] ss:$0 sm:$0xff]  ;;  %s233_s12 = smov [#allocation7]   ;;  %vm111_vm2 = vcmask 261120  }
  0x28   :  { %139 = vmatpush3.bf16.msra.mxu0 %v153_v1  ;;  %s119_s13 = sshll.u32 %s233_s12, 4  ;;  %s120_s13 = int_to_ptr.vmem [resolvable:$true] %s119_s13 }
  0x29   :  { %s199_s1 = scalar_lea.vmem %s120_s13, 256  ;;  %p204_p3 = scmp.lt.s32.totalorder %s120_s13, %s120_s13 }
  0x2a   :  { %p200_p2 = scmp.ne.s32.totalorder %s120_s13, %s199_s1  ;;  %p205_p4 = scmp.lt.s32.totalorder %s199_s1, %s199_s1 }
  0x2b   :  { %141 = vmatmul.mubr.msk.bf16.vlgmr.msra.gmra.mrb[0].mxu0 %vm66_vm1, %v154_v2 }
  0x2c   :  { %p206_p5 = por %p205_p4, %p204_p3 }
  0x2e   :  { %p207_p6 = pnand %p206_p5, %p200_p2 }
  0xfe   :  { %v104_v4 = vpop.f32.mrb[0].mxu0 }
  0xff   :  { %v105_v5 = vadd.f32 %v132_v3, %v104_v4  ;;  %v142_v6 = vpop.f32.mrb[1].mxu0 }
 0x100   :  { %v107_v7 = vpop.f32.mrb[2].mxu0 }
 0x101   :  { %112 = vst.msk [vmem:[#allocation7] sm:$0xff] %vm111_vm2, %v105_v5  ;;  %v108_v8 = vadd.f32 %v132_v3, %v107_v7  ;;  %v143_v9 = vpop.f32.mrb[3].mxu0 }
 0x103   :  { %113 = vst.msk [vmem:[#allocation7 + $0x8] sm:$0xff] %vm111_vm2, %v108_v8 }
 0x104   :  { %210 = shalt.err (!%p207_p6)
}
 0x105   :  { %s211_s15 = scalar_lea.hbm %s298_s3, 256 }
 0x106   :  { %p212_p7 = scmp.ne.s32.totalorder %s298_s3, %s211_s15  ;;  %p215_p8 = scmp.lt.u32.totalorder %s211_s15, %s298_s3 }
 0x108   :  { %p217_p9 = pnand %p215_p8, %p212_p7 }
 0x10a   :  { %220 = shalt.err (!%p217_p9)
}
 0x10b   :  { %s234_s20 = smov 128   ;;  %s235_s21 = smov 8  }
 0x10c   :  { %125 = dma.vmem_to_hbm [thread:$0]  %s120_s13, 256, %s298_s3, [#allocation4], %s234_s20, %s234_s20, %s235_s21  }
 0x10d   :  { %225 = dma.done.wait [#allocation4], 256  }
 0x10e   :  { %226 = vsyncadd [#allocation4], 4294967040 }
 0x10f   :  { %129 = vsyncpa [#allocation3], 1 }
 0x110   :  { %130 = vsyncpa [#allocation6], 1 }
 0x111   :  { %131 = vsyncpa [#allocation4], 1 }

</bundles_post_ra>
